<compile_context>
chip_gen: v7x
topology: tpu7x:2x2x1
jax: 0.10.0
libtpu: 0.0.40
codegen_flags: <defaults>
</compile_context>

<pallas_src>
import jax
import jax.numpy as jnp
from jax.experimental import pallas as pl
from jax.experimental.pallas import tpu as pltpu


def _predictor_kernel(val_ref, pres_ref, w1_ref, b1_ref, w2_ref, b2_ref, q_ref):
    # Preprocess: mask missing features.  value arrives bf16, presence int8 {0,1};
    # a single select keeps everything in bf16 (no cast chain on the VPU).
    x = jnp.where(pres_ref[...] != 0, val_ref[...], 0).astype(val_ref.dtype)  # [TB, D] bf16

    # Hidden layer (MXU): bf16 operands, f32 accumulation; bias + ReLU on VPU.
    h = jnp.dot(x, w1_ref[...], preferred_element_type=jnp.float32)           # [TB, H] f32
    h = jnp.maximum(h + b1_ref[...], 0.0)

    # Output layer (MXU): q-values per action (action dim lane-padded to 128).
    q = jnp.dot(h.astype(w2_ref.dtype), w2_ref[...],
                preferred_element_type=jnp.float32)                           # [TB, A_pad] f32
    q_ref[...] = q + b2_ref[...]


def _hw_config():
    """Returns (mxu_m, vmem_budget_bytes, num_tensorcores) for the attached TPU."""
    kind = ""
    try:
        kind = jax.devices()[0].device_kind.lower()
    except Exception:
        pass
    try:
        vmem_cap = int(pltpu.get_tpu_info().vmem_capacity_bytes)
    except Exception:
        vmem_cap = None

    if "v5 lite" in kind or "v5e" in kind or "v5lite" in kind:
        # 4x128^2 MXU, 128 MiB physical VMEM but 16 MiB scoped default, 1 TC.
        return 128, 16 << 20, 1
    if "v7" in kind:
        # 2x256^2 MXU, only 64 MiB VMEM per TC, 2 TCs -> keep generous headroom.
        cap = vmem_cap if vmem_cap is not None else 64 << 20
        return 256, min(cap // 2, 48 << 20), 2
    if "v4" in kind or "v5p" in kind:
        # Megacore chips: 2 TCs, 128-wide MXU M dim.
        cap = vmem_cap if vmem_cap is not None else 128 << 20
        return 128, min(cap // 2, 64 << 20), 2
    # Default: v6e-like (2x256^2 MXU, 128 MiB VMEM, 1 TC) -> use a large budget.
    cap = vmem_cap if vmem_cap is not None else 128 << 20
    return 256, min(max(cap - (32 << 20), 16 << 20), 96 << 20), 1


def _choose_batch_tile(batch, d, hidden, a_pad, pres_itemsize, mxu_m, budget_bytes, num_tc):
    """Pick a batch tile under the per-generation VMEM budget.

    Per-row VMEM: double-buffered bf16 value + int8 presence input blocks, a
    double-buffered f32 (TB, A_pad) output block, plus live x(bf16)/h(f32)/q(f32).
    Weights/biases are counted single-buffered (they're requested pl.Buffered(1)
    with constant block indices, so they're fetched once and stay resident).
    """
    per_row = (2 * d * (2 + pres_itemsize)      # value (bf16) + presence, double-buffered
               + 2 * a_pad * 4                  # q out block, double-buffered
               + 2 * d + 4 * hidden + 4 * a_pad)  # live intermediates
    resident = 2 * (d * hidden + hidden * a_pad) + 4 * (hidden + a_pad)
    tb = (budget_bytes - resident) // max(per_row, 1)
    tb = int(min(1024, max(32, (tb // 32) * 32)))
    if batch >= mxu_m:
        # Fill the MXU M dimension (256 on v6e/v7x, 128 on v5e) whenever B allows;
        # for realistic predictor sizes the activation rows are tiny vs. the budget.
        tb = max(tb, mxu_m)
    if batch <= tb:
        if num_tc >= 2 and batch > 64:
            # Split a single covering block in two so dimension_semantics=("parallel",)
            # has a tile for every TensorCore (v7x / megacore).
            half = (batch + num_tc - 1) // num_tc
            half = ((half + 31) // 32) * 32
            return max(32, half)
        return batch                            # single full block for small batches
    return tb


def predictor_forward(state_with_presence, params, action_names):
    """Mirrors OSSPredictorUnwrapper.forward: returns (List[str], q_values)."""
    value, presence = state_with_presence
    w1, b1, w2, b2 = params

    B, D = value.shape
    H = w1.shape[1]
    A = w2.shape[1]

    # Stream value in bf16: presence is {0,1} and the model multiplies in bf16 anyway,
    # so this is exact while halving the dominant streamed-input bytes.
    value_bf16 = value.astype(jnp.bfloat16)

    # Lane-dense output: pad the (tiny) action dim to a multiple of 128 so the q store
    # lowers to unmasked full-lane vst; real actions are sliced back outside.
    # NOTE: for tiny A at very large batch the padded f32 writeback adds HBM bytes;
    # an unpadded (TB, A) out block (masked vst, 128/A fewer bytes) is the alternative
    # worth benchmarking if the output write shows up in the roofline.
    A_pad = ((A + 127) // 128) * 128
    if A_pad != A:
        w2 = jnp.pad(w2, ((0, 0), (0, A_pad - A)))
        b2 = jnp.pad(b2, ((0, 0), (0, A_pad - A)))

    mxu_m, budget, num_tc = _hw_config()
    TB = _choose_batch_tile(B, D, H, A_pad, presence.dtype.itemsize,
                            mxu_m, budget, num_tc)
    grid = (pl.cdiv(B, TB),)

    cost = pl.CostEstimate(
        flops=2 * B * D * H + 2 * B * H * A_pad,
        transcendentals=0,
        bytes_accessed=(
            B * D * 2                                   # value (bf16)
            + B * D * presence.dtype.itemsize           # presence
            + w1.size * w1.dtype.itemsize + b1.size * b1.dtype.itemsize
            + w2.size * w2.dtype.itemsize + b2.size * b2.dtype.itemsize
            + B * A_pad * 4                             # q out (f32)
        ),
    )

    # TODO(synk): for very large D*H on v7x (64 MiB VMEM), add a K-tiled grid axis
    # ("arbitrary") with an f32 accumulator scratch instead of keeping all of W1 resident.

    def run(weight_mode):
        wkw = {} if weight_mode is None else {"pipeline_mode": weight_mode}
        return pl.pallas_call(
            _predictor_kernel,
            out_shape=jax.ShapeDtypeStruct((B, A_pad), jnp.float32),
            grid=grid,
            in_specs=[
                pl.BlockSpec((TB, D), lambda i: (i, 0)),        # value    (streamed, bf16)
                pl.BlockSpec((TB, D), lambda i: (i, 0)),        # presence (streamed, int8)
                pl.BlockSpec((D, H), lambda i: (0, 0), **wkw),  # W1 (resident, bf16)
                pl.BlockSpec((1, H), lambda i: (0, 0), **wkw),  # b1 (f32)
                pl.BlockSpec((H, A_pad), lambda i: (0, 0), **wkw),  # W2 (resident, bf16)
                pl.BlockSpec((1, A_pad), lambda i: (0, 0), **wkw),  # b2 (f32, lane-padded)
            ],
            out_specs=pl.BlockSpec((TB, A_pad), lambda i: (i, 0)),
            compiler_params=pltpu.CompilerParams(
                # Batch tiles are independent -> shard grid across TensorCores.
                dimension_semantics=("parallel",),
                # Generation-aware scoped-VMEM limit (budget + headroom for internals).
                vmem_limit_bytes=int(budget + (8 << 20)),
            ),
            cost_estimate=cost,
        )(value_bf16, presence, w1, b1, w2, b2)

    try:
        # Weights/biases have constant block indices: single-buffer them so default
        # double-buffering doesn't reserve an extra 2*(D*H + H*A_pad) bytes of VMEM.
        q_padded = run(pl.Buffered(1))
    except Exception:
        # Fallback for Pallas builds that reject single-buffered BlockSpecs.
        q_padded = run(None)

    return action_names, q_padded[:, :A]


def init_params(state_dim, hidden_dim, num_actions):
    # Deterministic synthetic parameters (no checkpoint load).  Weights in bf16 for
    # the MXU (f32 accumulation in-kernel), biases in f32.  For production sizes,
    # keep state_dim/hidden_dim multiples of 256 (v6e/v7x) or 128 (v5e).
    k = jax.random.PRNGKey(42)
    k1, k2, k3, k4 = jax.random.split(k, 4)
    w1 = (jax.random.normal(k1, (state_dim, hidden_dim), jnp.float32) * 0.1).astype(jnp.bfloat16)
    b1 = jax.random.normal(k2, (1, hidden_dim), jnp.float32) * 0.01
    w2 = (jax.random.normal(k3, (hidden_dim, num_actions), jnp.float32) * 0.1).astype(jnp.bfloat16)
    b2 = jax.random.normal(k4, (1, num_actions), jnp.float32) * 0.01
    return w1, b1, w2, b2


if __name__ == "__main__":
    B, D, H, A = 2, 16, 32, 4
    action_names = [f"action_{i}" for i in range(A)]

    key = jax.random.PRNGKey(0)
    kv, kp = jax.random.split(key)
    value = jax.random.normal(kv, (B, D), jnp.float32)
    # presence mask stored narrow (int8 {0,1}); masking happens inside the kernel.
    presence = (jax.random.uniform(kp, (B, D)) > 0.3).astype(jnp.int8)

    params = init_params(D, H, A)

    names, q = predictor_forward((value, presence), params, action_names)
    q = jax.block_until_ready(q)

    # Reference: identical precision path (bf16 masked input, bf16 MXU operands,
    # f32 accumulation) in plain JAX.
    w1, b1, w2, b2 = params
    x = jnp.where(presence != 0, value.astype(jnp.bfloat16), 0).astype(jnp.bfloat16)
    h = jnp.maximum(jnp.dot(x, w1, preferred_element_type=jnp.float32) + b1, 0.0)
    ref = jnp.dot(h.astype(jnp.bfloat16), w2, preferred_element_type=jnp.float32) + b2

    assert q.shape == (B, A)
    assert names == action_names
    assert jnp.allclose(q, ref, atol=1e-3, rtol=1e-3), "mismatch vs reference"

    print("KERNEL_OK")
</pallas_src>

<mosaic_0001>
module attributes {stable_mosaic.version = 11 : i64} {
  func.func @_predictor_kernel(%arg0: i32, %arg1: memref<2x16xbf16, #tpu.memory_space<vmem>>, %arg2: memref<2x16xi8, #tpu.memory_space<vmem>>, %arg3: memref<16x32xbf16, #tpu.memory_space<vmem>>, %arg4: memref<1x32xf32, #tpu.memory_space<vmem>>, %arg5: memref<32x128xbf16, #tpu.memory_space<vmem>>, %arg6: memref<1x128xf32, #tpu.memory_space<vmem>>, %arg7: memref<2x128xf32, #tpu.memory_space<vmem>>) attributes {dimension_semantics = [#tpu.dimension_semantics<parallel>], iteration_bounds = array<i64: 1>, scalar_prefetch = 0 : i64, scratch_operands = 0 : i64, tpu.core_type = #tpu.core_type<tc>, window_params = [{transform_indices = @transform_0, window_bounds = array<i64: 2, 16>}, {transform_indices = @transform_1, window_bounds = array<i64: 2, 16>}, {pipeline_mode = #tpu.pipeline_mode<synchronous>, transform_indices = @transform_2, window_bounds = array<i64: 16, 32>}, {pipeline_mode = #tpu.pipeline_mode<synchronous>, transform_indices = @transform_3, window_bounds = array<i64: 1, 32>}, {pipeline_mode = #tpu.pipeline_mode<synchronous>, transform_indices = @transform_4, window_bounds = array<i64: 32, 128>}, {pipeline_mode = #tpu.pipeline_mode<synchronous>, transform_indices = @transform_5, window_bounds = array<i64: 1, 128>}, {transform_indices = @transform_6, window_bounds = array<i64: 2, 128>}]} {
    %c0 = arith.constant 0 : index
    %c0_0 = arith.constant 0 : index
    %0 = vector.load %arg2[%c0, %c0_0] : memref<2x16xi8, #tpu.memory_space<vmem>>, vector<2x16xi8>
    %c0_i8 = arith.constant 0 : i8
    %1 = vector.broadcast %c0_i8 : i8 to vector<2x16xi8>
    %2 = arith.cmpi ne, %0, %1 : vector<2x16xi8>
    %c0_1 = arith.constant 0 : index
    %c0_2 = arith.constant 0 : index
    %3 = vector.load %arg1[%c0_1, %c0_2] : memref<2x16xbf16, #tpu.memory_space<vmem>>, vector<2x16xbf16>
    %c0_i32 = arith.constant 0 : i32
    %4 = arith.sitofp %c0_i32 : i32 to bf16
    %5 = vector.broadcast %4 : bf16 to vector<2x16xbf16>
    %6 = arith.select %2, %3, %5 : vector<2x16xi1>, vector<2x16xbf16>
    %c0_3 = arith.constant 0 : index
    %c0_4 = arith.constant 0 : index
    %7 = vector.load %arg3[%c0_3, %c0_4] : memref<16x32xbf16, #tpu.memory_space<vmem>>, vector<16x32xbf16>
    %cst = arith.constant dense<0.000000e+00> : vector<2x32xf32>
    %8 = tpu.matmul %6, %7, %cst {dimension_numbers = #tpu.dot_dimension_numbers<[1], [0], [0], [1], [0, 0, 1, 1], [], []>} : vector<2x16xbf16>, vector<16x32xbf16>, vector<2x32xf32> -> vector<2x32xf32>
    %c0_5 = arith.constant 0 : index
    %c0_6 = arith.constant 0 : index
    %9 = vector.load %arg4[%c0_5, %c0_6] : memref<1x32xf32, #tpu.memory_space<vmem>>, vector<1x32xf32>
    %10 = vector.broadcast %9 : vector<1x32xf32> to vector<2x32xf32>
    %11 = arith.addf %8, %10 : vector<2x32xf32>
    %cst_7 = arith.constant 0.000000e+00 : f32
    %12 = vector.broadcast %cst_7 : f32 to vector<2x32xf32>
    %13 = arith.maximumf %11, %12 : vector<2x32xf32>
    %14 = arith.truncf %13 : vector<2x32xf32> to vector<2x32xbf16>
    %c0_8 = arith.constant 0 : index
    %c0_9 = arith.constant 0 : index
    %15 = vector.load %arg5[%c0_8, %c0_9] : memref<32x128xbf16, #tpu.memory_space<vmem>>, vector<32x128xbf16>
    %cst_10 = arith.constant dense<0.000000e+00> : vector<2x128xf32>
    %16 = tpu.matmul %14, %15, %cst_10 {dimension_numbers = #tpu.dot_dimension_numbers<[1], [0], [0], [1], [0, 0, 1, 1], [], []>} : vector<2x32xbf16>, vector<32x128xbf16>, vector<2x128xf32> -> vector<2x128xf32>
    %c0_11 = arith.constant 0 : index
    %c0_12 = arith.constant 0 : index
    %17 = vector.load %arg6[%c0_11, %c0_12] : memref<1x128xf32, #tpu.memory_space<vmem>>, vector<1x128xf32>
    %18 = vector.broadcast %17 : vector<1x128xf32> to vector<2x128xf32>
    %19 = arith.addf %16, %18 : vector<2x128xf32>
    %c0_13 = arith.constant 0 : index
    %c0_14 = arith.constant 0 : index
    %20 = vector.load %arg7[%c0_13, %c0_14] : memref<2x128xf32, #tpu.memory_space<vmem>>, vector<2x128xf32>
    tpu.vector_store %arg7[%c0_13, %c0_14], %19 {strides = array<i32>} : memref<2x128xf32, #tpu.memory_space<vmem>>, vector<2x128xf32>,
    return
  }
  func.func @transform_0(%arg0: i32) -> (i32, i32) {
    %c0_i32 = arith.constant 0 : i32
    %c0_i32_0 = arith.constant 0 : i32
    return %arg0, %c0_i32 : i32, i32
  }
  func.func @transform_1(%arg0: i32) -> (i32, i32) {
    %c0_i32 = arith.constant 0 : i32
    %c0_i32_0 = arith.constant 0 : i32
    return %arg0, %c0_i32 : i32, i32
  }
  func.func @transform_2(%arg0: i32) -> (i32, i32) {
    %c0_i32 = arith.constant 0 : i32
    %c0_i32_0 = arith.constant 0 : i32
    %c0_i32_1 = arith.constant 0 : i32
    return %c0_i32, %c0_i32_0 : i32, i32
  }
  func.func @transform_3(%arg0: i32) -> (i32, i32) {
    %c0_i32 = arith.constant 0 : i32
    %c0_i32_0 = arith.constant 0 : i32
    %c0_i32_1 = arith.constant 0 : i32
    return %c0_i32, %c0_i32_0 : i32, i32
  }
  func.func @transform_4(%arg0: i32) -> (i32, i32) {
    %c0_i32 = arith.constant 0 : i32
    %c0_i32_0 = arith.constant 0 : i32
    %c0_i32_1 = arith.constant 0 : i32
    return %c0_i32, %c0_i32_0 : i32, i32
  }
  func.func @transform_5(%arg0: i32) -> (i32, i32) {
    %c0_i32 = arith.constant 0 : i32
    %c0_i32_0 = arith.constant 0 : i32
    %c0_i32_1 = arith.constant 0 : i32
    return %c0_i32, %c0_i32_0 : i32, i32
  }
  func.func @transform_6(%arg0: i32) -> (i32, i32) {
    %c0_i32 = arith.constant 0 : i32
    %c0_i32_0 = arith.constant 0 : i32
    return %arg0, %c0_i32 : i32, i32
  }
}

module attributes {stable_mosaic.version = 11 : i64} {
  func.func @_predictor_kernel(%arg0: i32, %arg1: memref<2x16xbf16, #tpu.memory_space<vmem>>, %arg2: memref<2x16xi8, #tpu.memory_space<vmem>>, %arg3: memref<16x32xbf16, #tpu.memory_space<vmem>>, %arg4: memref<1x32xf32, #tpu.memory_space<vmem>>, %arg5: memref<32x128xbf16, #tpu.memory_space<vmem>>, %arg6: memref<1x128xf32, #tpu.memory_space<vmem>>, %arg7: memref<2x128xf32, #tpu.memory_space<vmem>>) attributes {dimension_semantics = [#tpu.dimension_semantics<parallel>], iteration_bounds = array<i64: 1>, scalar_prefetch = 0 : i64, scratch_operands = 0 : i64, tpu.core_type = #tpu.core_type<tc>, window_params = [{transform_indices = @transform_0, window_bounds = array<i64: 2, 16>}, {transform_indices = @transform_1, window_bounds = array<i64: 2, 16>}, {pipeline_mode = #tpu.pipeline_mode<synchronous>, transform_indices = @transform_2, window_bounds = array<i64: 16, 32>}, {pipeline_mode = #tpu.pipeline_mode<synchronous>, transform_indices = @transform_3, window_bounds = array<i64: 1, 32>}, {pipeline_mode = #tpu.pipeline_mode<synchronous>, transform_indices = @transform_4, window_bounds = array<i64: 32, 128>}, {pipeline_mode = #tpu.pipeline_mode<synchronous>, transform_indices = @transform_5, window_bounds = array<i64: 1, 128>}, {transform_indices = @transform_6, window_bounds = array<i64: 2, 128>}]} {
    %c0 = arith.constant 0 : index
    %c0_0 = arith.constant 0 : index
    %0 = vector.load %arg2[%c0, %c0_0] : memref<2x16xi8, #tpu.memory_space<vmem>>, vector<2x16xi8>
    %c0_i8 = arith.constant 0 : i8
    %1 = vector.broadcast %c0_i8 : i8 to vector<2x16xi8>
    %2 = arith.cmpi ne, %0, %1 : vector<2x16xi8>
    %c0_1 = arith.constant 0 : index
    %c0_2 = arith.constant 0 : index
    %3 = vector.load %arg1[%c0_1, %c0_2] : memref<2x16xbf16, #tpu.memory_space<vmem>>, vector<2x16xbf16>
    %c0_i32 = arith.constant 0 : i32
    %4 = arith.sitofp %c0_i32 : i32 to bf16
    %5 = vector.broadcast %4 : bf16 to vector<2x16xbf16>
    %6 = arith.select %2, %3, %5 : vector<2x16xi1>, vector<2x16xbf16>
    %c0_3 = arith.constant 0 : index
    %c0_4 = arith.constant 0 : index
    %7 = vector.load %arg3[%c0_3, %c0_4] : memref<16x32xbf16, #tpu.memory_space<vmem>>, vector<16x32xbf16>
    %cst = arith.constant dense<0.000000e+00> : vector<2x32xf32>
    %8 = tpu.matmul %6, %7, %cst {dimension_numbers = #tpu.dot_dimension_numbers<[1], [0], [0], [1], [0, 0, 1, 1], [], []>} : vector<2x16xbf16>, vector<16x32xbf16>, vector<2x32xf32> -> vector<2x32xf32>
    %c0_5 = arith.constant 0 : index
    %c0_6 = arith.constant 0 : index
    %9 = vector.load %arg4[%c0_5, %c0_6] : memref<1x32xf32, #tpu.memory_space<vmem>>, vector<1x32xf32>
    %10 = vector.broadcast %9 : vector<1x32xf32> to vector<2x32xf32>
    %11 = arith.addf %8, %10 : vector<2x32xf32>
    %cst_7 = arith.constant 0.000000e+00 : f32
    %12 = vector.broadcast %cst_7 : f32 to vector<2x32xf32>
    %13 = arith.maximumf %11, %12 : vector<2x32xf32>
    %14 = arith.truncf %13 : vector<2x32xf32> to vector<2x32xbf16>
    %c0_8 = arith.constant 0 : index
    %c0_9 = arith.constant 0 : index
    %15 = vector.load %arg5[%c0_8, %c0_9] : memref<32x128xbf16, #tpu.memory_space<vmem>>, vector<32x128xbf16>
    %cst_10 = arith.constant dense<0.000000e+00> : vector<2x128xf32>
    %16 = tpu.matmul %14, %15, %cst_10 {dimension_numbers = #tpu.dot_dimension_numbers<[1], [0], [0], [1], [0, 0, 1, 1], [], []>} : vector<2x32xbf16>, vector<32x128xbf16>, vector<2x128xf32> -> vector<2x128xf32>
    %c0_11 = arith.constant 0 : index
    %c0_12 = arith.constant 0 : index
    %17 = vector.load %arg6[%c0_11, %c0_12] : memref<1x128xf32, #tpu.memory_space<vmem>>, vector<1x128xf32>
    %18 = vector.broadcast %17 : vector<1x128xf32> to vector<2x128xf32>
    %19 = arith.addf %16, %18 : vector<2x128xf32>
    %c0_13 = arith.constant 0 : index
    %c0_14 = arith.constant 0 : index
    %20 = vector.load %arg7[%c0_13, %c0_14] : memref<2x128xf32, #tpu.memory_space<vmem>>, vector<2x128xf32>
    tpu.vector_store %arg7[%c0_13, %c0_14], %19 {strides = array<i32>} : memref<2x128xf32, #tpu.memory_space<vmem>>, vector<2x128xf32>,
    return
  }
  func.func @transform_0(%arg0: i32) -> (i32, i32) {
    %c0_i32 = arith.constant 0 : i32
    %c0_i32_0 = arith.constant 0 : i32
    return %arg0, %c0_i32 : i32, i32
  }
  func.func @transform_1(%arg0: i32) -> (i32, i32) {
    %c0_i32 = arith.constant 0 : i32
    %c0_i32_0 = arith.constant 0 : i32
    return %arg0, %c0_i32 : i32, i32
  }
  func.func @transform_2(%arg0: i32) -> (i32, i32) {
    %c0_i32 = arith.constant 0 : i32
    %c0_i32_0 = arith.constant 0 : i32
    %c0_i32_1 = arith.constant 0 : i32
    return %c0_i32, %c0_i32_0 : i32, i32
  }
  func.func @transform_3(%arg0: i32) -> (i32, i32) {
    %c0_i32 = arith.constant 0 : i32
    %c0_i32_0 = arith.constant 0 : i32
    %c0_i32_1 = arith.constant 0 : i32
    return %c0_i32, %c0_i32_0 : i32, i32
  }
  func.func @transform_4(%arg0: i32) -> (i32, i32) {
    %c0_i32 = arith.constant 0 : i32
    %c0_i32_0 = arith.constant 0 : i32
    %c0_i32_1 = arith.constant 0 : i32
    return %c0_i32, %c0_i32_0 : i32, i32
  }
  func.func @transform_5(%arg0: i32) -> (i32, i32) {
    %c0_i32 = arith.constant 0 : i32
    %c0_i32_0 = arith.constant 0 : i32
    %c0_i32_1 = arith.constant 0 : i32
    return %c0_i32, %c0_i32_0 : i32, i32
  }
  func.func @transform_6(%arg0: i32) -> (i32, i32) {
    %c0_i32 = arith.constant 0 : i32
    %c0_i32_0 = arith.constant 0 : i32
    return %arg0, %c0_i32 : i32, i32
  }
}

</mosaic_0001>

<bundles_post_ra>
// kernel: tpu_custom_call.1
= control target key start
LH: loop header
LB: loop body
LE: loop exit
PB: predicated region body
PF: predicated region fallthrough
CT: control target
= control target key end

     0   :  { %11 = vsyncpa [#allocation3], 0  ;;  %s601_s0 = inlined_call_operand.hbm [shape: bf16[2,16], index: 0, kind: input, shape index: {}]   ;;  %s602_s1 = inlined_call_operand.hbm [shape: s8[2,16], index: 1, kind: input, shape index: {}]   ;;  %s603_s2 = inlined_call_operand.hbm [shape: bf16[16,32], index: 2, kind: input, shape index: {}]   ;;  %s604_s3 = inlined_call_operand.hbm [shape: f32[1,32], index: 3, kind: input, shape index: {}]   ;;  %s605_s4 = inlined_call_operand.hbm [shape: bf16[32,128], index: 4, kind: input, shape index: {}]   ;;  %s606_s5 = inlined_call_operand.hbm [shape: f32[1,128], index: 5, kind: input, shape index: {}]   ;;  %s607_s6 = inlined_call_operand.hbm [shape: f32[2,128], index: 6, kind: output, shape index: {}]  }
   0x1   :  { %12 = vsyncpa [#allocation6], 0 }
   0x2   :  { %13 = vsyncpa [#allocation9], 0 }
   0x3   :  { %14 = vsyncpa [#allocation12], 0 }
   0x4   :  { %15 = vsyncpa [#allocation4], 0  ;;  %s463_s21 = smov [#allocation5]   ;;  %s464_s23 = smov [#allocation8]  }
   0x5   :  { %s32_s22 = sshll.u32 %s463_s21, 4  ;;  %s54_s24 = sshll.u32 %s464_s23, 4  ;;  %s33_s22 = int_to_ptr.vmem [resolvable:$true] %s32_s22  ;;  %s55_s24 = int_to_ptr.vmem [resolvable:$true] %s54_s24 }
   0x6   :  { %s299_s27 = scalar_lea.hbm %s602_s1, 16 }
   0x7   :  { %p300_p0 = scmp.ne.s32.totalorder %s602_s1, %s299_s27  ;;  %p303_p1 = scmp.lt.u32.totalorder %s299_s27, %s602_s1 }
   0x9   :  { %p305_p2 = pnand %p303_p1, %p300_p0 }
   0xb   :  { %308 = shalt.err (!%p305_p2)
}
   0xc   :  { %s309_s8 = scalar_lea.vmem %s33_s22, 16  ;;  %s313_s9 = scalar_lea.vmem %s33_s22, 32 }
   0xd   :  { %p310_p3 = scmp.ne.s32.totalorder %s33_s22, %s309_s8  ;;  %p314_p4 = scmp.lt.s32.totalorder %s33_s22, %s33_s22 }
   0xe   :  { %p315_p5 = scmp.lt.s32.totalorder %s313_s9, %s309_s8 }
  0x10   :  { %p316_p6 = por %p315_p5, %p314_p4 }
  0x12   :  { %p317_p7 = pnand %p316_p6, %p310_p3 }
  0x14   :  { %320 = shalt.err (!%p317_p7)
}
  0x15   :  { %35 = dma.hbm_to_vmem [thread:$0]  %s602_s1, 16, %s33_s22, [#allocation6]  }
  0x16   :  { %s321_s14 = scalar_lea.hbm %s604_s3, 16 }
  0x17   :  { %p322_p8 = scmp.ne.s32.totalorder %s604_s3, %s321_s14  ;;  %p325_p9 = scmp.lt.u32.totalorder %s321_s14, %s604_s3 }
  0x19   :  { %p327_p10 = pnand %p325_p9, %p322_p8 }
  0x1b   :  { %330 = shalt.err (!%p327_p10)
}
  0x1c   :  { %s331_s19 = scalar_lea.vmem %s55_s24, 16  ;;  %s335_s20 = scalar_lea.vmem %s55_s24, 32 }
  0x1d   :  { %p332_p11 = scmp.ne.s32.totalorder %s55_s24, %s331_s19  ;;  %p336_p12 = scmp.lt.s32.totalorder %s55_s24, %s55_s24 }
  0x1e   :  { %p337_p13 = scmp.lt.s32.totalorder %s335_s20, %s331_s19 }
  0x20   :  { %p338_p0 = por %p337_p13, %p336_p12 }
  0x22   :  { %p339_p1 = pnand %p338_p0, %p332_p11 }
  0x24   :  { %342 = shalt.err (!%p339_p1)
}
  0x25   :  { %57 = dma.hbm_to_vmem [thread:$0]  %s604_s3, 16, %s55_s24, [#allocation9]  }
  0x26   :  { %s465_s22 = smov [#allocation2]   ;;  %s466_s25 = smov [#allocation7]  }
  0x27   :  { %s22_s23 = sshll.u32 %s465_s22, 4  ;;  %s41_s26 = sshll.u32 %s466_s25, 4  ;;  %s23_s23 = int_to_ptr.vmem [resolvable:$true] %s22_s23  ;;  %s534_s26 = int_to_ptr.vmem [resolvable:$true] %s41_s26 }
  0x28   :  { %s343_s29 = scalar_lea.hbm %s601_s0, 16 }
  0x29   :  { %p344_p2 = scmp.ne.s32.totalorder %s601_s0, %s343_s29  ;;  %p347_p3 = scmp.lt.u32.totalorder %s343_s29, %s601_s0 }
  0x2b   :  { %p349_p4 = pnand %p347_p3, %p344_p2 }
  0x2d   :  { %352 = shalt.err (!%p349_p4)
}
  0x2e   :  { %s353_s3 = scalar_lea.vmem %s23_s23, 16  ;;  %s357_s24 = scalar_lea.vmem %s23_s23, 32 }
  0x2f   :  { %p354_p5 = scmp.ne.s32.totalorder %s23_s23, %s353_s3  ;;  %p358_p6 = scmp.lt.s32.totalorder %s23_s23, %s23_s23 }
  0x30   :  { %p359_p7 = scmp.lt.s32.totalorder %s357_s24, %s353_s3 }
  0x32   :  { %p360_p8 = por %p359_p7, %p358_p6 }
  0x34   :  { %p361_p9 = pnand %p360_p8, %p354_p5 }
  0x36   :  { %364 = shalt.err (!%p361_p9)
}
  0x37   :  { %25 = dma.hbm_to_vmem [thread:$0]  %s601_s0, 16, %s23_s23, [#allocation3]  }
  0x38   :  { %s365_s14 = scalar_lea.hbm %s603_s2, 128 }
  0x39   :  { %p366_p10 = scmp.ne.s32.totalorder %s603_s2, %s365_s14  ;;  %p369_p11 = scmp.lt.u32.totalorder %s365_s14, %s603_s2 }
  0x3b   :  { %p371_p12 = pnand %p369_p11, %p366_p10 }
  0x3d   :  { %374 = shalt.err (!%p371_p12)
}
  0x3e   :  { %s375_s19 = scalar_lea.vmem %s534_s26, 128  ;;  %p380_p0 = scmp.lt.s32.totalorder %s534_s26, %s534_s26 }
  0x3f   :  { %p376_p13 = scmp.ne.s32.totalorder %s534_s26, %s375_s19  ;;  %p381_p1 = scmp.lt.s32.totalorder %s375_s19, %s375_s19 }
  0x41   :  { %p382_p2 = por %p381_p1, %p380_p0 }
  0x43   :  { %p383_p3 = pnand %p382_p2, %p376_p13 }
  0x45   :  { %386 = shalt.err (!%p383_p3)
}
  0x46   :  { %s467_s0 = smov 64   ;;  %s468_s20 = smov 4  }
  0x47   :  { %47 = dma.hbm_to_vmem [thread:$0]  %s603_s2, 128, %s534_s26, [#allocation6], %s467_s0, %s467_s0, %s468_s20  }
  0x48   :  { %s469_s22 = smov [#allocation10]   ;;  %s470_s25 = smov [#allocation11]  }
  0x49   :  { %s63_s23 = sshll.u32 %s469_s22, 4  ;;  %s76_s27 = sshll.u32 %s470_s25, 4  ;;  %s64_s23 = int_to_ptr.vmem [resolvable:$true] %s63_s23  ;;  %s77_s27 = int_to_ptr.vmem [resolvable:$true] %s76_s27 }
  0x4a   :  { %s387_s30 = scalar_lea.hbm %s605_s4, 256 }
  0x4b   :  { %p388_p4 = scmp.ne.s32.totalorder %s605_s4, %s387_s30  ;;  %p391_p5 = scmp.lt.u32.totalorder %s387_s30, %s605_s4 }
  0x4d   :  { %p393_p6 = pnand %p391_p5, %p388_p4 }
  0x4f   :  { %396 = shalt.err (!%p393_p6)
}
  0x50   :  { %s397_s2 = scalar_lea.vmem %s64_s23, 256  ;;  %p402_p8 = scmp.lt.s32.totalorder %s64_s23, %s64_s23 }
  0x51   :  { %p398_p7 = scmp.ne.s32.totalorder %s64_s23, %s397_s2  ;;  %p403_p9 = scmp.lt.s32.totalorder %s397_s2, %s397_s2 }
  0x53   :  { %p404_p10 = por %p403_p9, %p402_p8 }
  0x55   :  { %p405_p11 = pnand %p404_p10, %p398_p7 }
  0x57   :  { %408 = shalt.err (!%p405_p11)
}
  0x58   :  { %69 = dma.hbm_to_vmem [thread:$0]  %s605_s4, 256, %s64_s23, [#allocation9], %s467_s0, %s467_s0, %s468_s20  }
  0x59   :  { %s409_s12 = scalar_lea.hbm %s606_s5, 16 }
  0x5a   :  { %p410_p12 = scmp.ne.s32.totalorder %s606_s5, %s409_s12  ;;  %p413_p13 = scmp.lt.u32.totalorder %s409_s12, %s606_s5 }
  0x5c   :  { %p415_p0 = pnand %p413_p13, %p410_p12 }
  0x5e   :  { %418 = shalt.err (!%p415_p0)
}
  0x5f   :  { %s419_s17 = scalar_lea.vmem %s77_s27, 16  ;;  %s423_s18 = scalar_lea.vmem %s77_s27, 32 }
  0x60   :  { %p420_p1 = scmp.ne.s32.totalorder %s77_s27, %s419_s17  ;;  %p424_p2 = scmp.lt.s32.totalorder %s77_s27, %s77_s27 }
  0x61   :  { %p425_p3 = scmp.lt.s32.totalorder %s423_s18, %s419_s17 }
  0x63   :  { %p426_p4 = por %p425_p3, %p424_p2 }
  0x65   :  { %p427_p5 = pnand %p426_p4, %p420_p1 }
  0x67   :  { %430 = shalt.err (!%p427_p5)
}
  0x68   :  { %79 = dma.hbm_to_vmem [thread:$0]  %s606_s5, 16, %s77_s27, [#allocation12]  }
  0x69   :  { %453 = dma.done.wait [#allocation3], 16  }
  0x6a   :  { %454 = vsyncadd [#allocation3], 4294967280 }
  0x6b   :  { %455 = dma.done.wait [#allocation6], 144  }
  0x6c   :  { %456 = vsyncadd [#allocation6], 4294967152 }
  0x6d   :  { %457 = dma.done.wait [#allocation9], 272  }
  0x6e   :  { %458 = vsyncadd [#allocation9], 4294967024 }
  0x6f   :  { %459 = dma.done.wait [#allocation12], 16  }
  0x70   :  { %460 = vsyncadd [#allocation12], 4294967280  ;;  %v471_v0 = vmov 0.0   ;;  %vm472_vm0 = vmmov 0   ;;  %v296_v1 = vld [vmem:[#allocation7] sm:$0xff]   ;;  %v473_v3 = vmov 0  }
  0x71   :  { %270 = vmatprep.subr.bf16.mxu0 %v471_v0  ;;  %272 = vmatprep.mubr.msk.bf16.mxu0 %vm472_vm0, %v471_v0  ;;  %v102_v2 = vld [vmem:[#allocation5] sm:$0x1]  ;;  %v104_v7 = vld [vmem:[#allocation2] sm:$0x1]  ;;  %vm126_vm2 = vcmask 130048   ;;  %v297_v10 = vld [vmem:[#allocation10] sm:$0xff]  }
  0x72   :  { %276 = vmatprep.subr.bf16.mxu1 %v471_v0  ;;  %280 = vmatprep.mubr.msk.bf16.mxu1 %vm472_vm0, %v471_v0  ;;  %vm103_vm1 = vnez %v102_v2  ;;  %v298_v11 = vld [vmem:[#allocation10 + $0x8] sm:$0xff]   ;;  %v258_v12 = vld [vmem:[#allocation8] ss:$0 sm:$0xff]  ;;  %vm195_vm4 = vcmask 261120   ;;  %v261_v20 = vld [vmem:[#allocation11] ss:$0 sm:$0xff] }
  0x73   :  { %271 = vmatpush3.bf16.msra.mxu0 %v296_v1  ;;  %v105_v4 = vsel %vm103_vm1, 16843009, %v473_v3  ;;  %277 = vmatpush3.bf16.msra.mxu1 %v297_v10  ;;  %s474_s5 = smov [#allocation13]  }
  0x74   :  { %v106_v5 = vunpack.c.1.s8 %v105_v4  ;;  %v107_v6 = vunpack.c.0.s8 %v105_v4  ;;  %278 = vmatprep.subr.bf16.mxu1 %v471_v0  ;;  %s246_s0 = sshll.u32 %s474_s5, 4  ;;  %s247_s0 = int_to_ptr.vmem [resolvable:$true] %s246_s0 }
  0x75   :  { %s431_s20 = scalar_lea.vmem %s247_s0, 32  ;;  %p436_p7 = scmp.lt.s32.totalorder %s247_s0, %s247_s0 }
  0x76   :  { %v108_v8 = vpack.c.b16 %v106_v5, %v107_v6  ;;  %p432_p6 = scmp.ne.s32.totalorder %s247_s0, %s431_s20  ;;  %p437_p8 = scmp.lt.s32.totalorder %s431_s20, %s431_s20 }
  0x77   :  { %279 = vmatpush3.bf16.msra.mxu1 %v298_v11 }
  0x78   :  { %vm109_vm3 = vcmp.ne.s16.totalorder %v108_v8, 0  ;;  %p438_p9 = por %p437_p8, %p436_p7 }
  0x79   :  { %v110_v9 = vsel %vm109_vm3, %v104_v7, 0 }
  0x7a   :  { %273 = vmatmul.mubr.msk.bf16.vlgmr.msra.gmra.mrb[0].mxu0 %vm126_vm2, %v110_v9  ;;  %p439_p10 = pnand %p438_p9, %p432_p6 }
 0x14d   :  { %v164_v13 = vpop.f32.mrb[0].mxu0 }
 0x14e   :  { %v165_v14 = vadd.f32 %v258_v12, %v164_v13  ;;  %v274_v15 = vpop.f32.mrb[1].mxu0 }
 0x14f   :  { %v167_v16 = vpop.f32.mrb[2].mxu0 }
 0x150   :  { %v170_v17 = vmax.f32 %v165_v14, 0.0  ;;  %v275_v18 = vpop.f32.mrb[3].mxu0 }
 0x152   :  { %v171_v19 = vpack.c.bf16 %v170_v17, %v170_v17 }
 0x154   :  { %281 = vmatmul.mubr.msk.bf16.vlgmr.msra.gmra.mrb[0].mxu1 %vm195_vm4, %v171_v19 }
 0x227   :  { %v233_v21 = vpop.f32.mrb[0].mxu1 }
 0x228   :  { %v234_v22 = vadd.f32 %v261_v20, %v233_v21  ;;  %v282_v23 = vpop.f32.mrb[1].mxu1 }
 0x229   :  { %v236_v24 = vpop.f32.mrb[2].mxu1 }
 0x22a   :  { %239 = vst [vmem:[#allocation13] sm:$0x3] %v234_v22  ;;  %v283_v25 = vpop.f32.mrb[3].mxu1 }
 0x22b   :  { %442 = shalt.err (!%p439_p10)
}
 0x22c   :  { %s443_s22 = scalar_lea.hbm %s607_s6, 32 }
 0x22d   :  { %p444_p11 = scmp.ne.s32.totalorder %s607_s6, %s443_s22  ;;  %p447_p12 = scmp.lt.u32.totalorder %s443_s22, %s607_s6 }
 0x22f   :  { %p449_p13 = pnand %p447_p12, %p444_p11 }
 0x231   :  { %452 = shalt.err (!%p449_p13)
}
 0x232   :  { %249 = dma.vmem_to_hbm [thread:$0]  %s247_s0, 32, %s607_s6, [#allocation4]  }
 0x233   :  { %461 = dma.done.wait [#allocation4], 32  }
 0x234   :  { %462 = vsyncadd [#allocation4], 4294967264 }
 0x235   :  { %253 = vsyncpa [#allocation3], 1 }
 0x236   :  { %254 = vsyncpa [#allocation6], 1 }
 0x237   :  { %255 = vsyncpa [#allocation9], 1 }
 0x238   :  { %256 = vsyncpa [#allocation12], 1 }
 0x239   :  { %257 = vsyncpa [#allocation4], 1 }

// kernel: tpu_custom_call.1
= control target key start
LH: loop header
LB: loop body
LE: loop exit
PB: predicated region body
PF: predicated region fallthrough
CT: control target
= control target key end

     0   :  { %11 = vsyncpa [#allocation3], 0  ;;  %s601_s0 = inlined_call_operand.hbm [shape: bf16[2,16], index: 0, kind: input, shape index: {}]   ;;  %s602_s1 = inlined_call_operand.hbm [shape: s8[2,16], index: 1, kind: input, shape index: {}]   ;;  %s603_s2 = inlined_call_operand.hbm [shape: bf16[16,32], index: 2, kind: input, shape index: {}]   ;;  %s604_s3 = inlined_call_operand.hbm [shape: f32[1,32], index: 3, kind: input, shape index: {}]   ;;  %s605_s4 = inlined_call_operand.hbm [shape: bf16[32,128], index: 4, kind: input, shape index: {}]   ;;  %s606_s5 = inlined_call_operand.hbm [shape: f32[1,128], index: 5, kind: input, shape index: {}]   ;;  %s607_s6 = inlined_call_operand.hbm [shape: f32[2,128], index: 6, kind: output, shape index: {}]  }
   0x1   :  { %12 = vsyncpa [#allocation6], 0 }
   0x2   :  { %13 = vsyncpa [#allocation9], 0 }
   0x3   :  { %14 = vsyncpa [#allocation12], 0 }
   0x4   :  { %15 = vsyncpa [#allocation4], 0  ;;  %s463_s21 = smov [#allocation5]   ;;  %s464_s23 = smov [#allocation8]  }
   0x5   :  { %s32_s22 = sshll.u32 %s463_s21, 4  ;;  %s54_s24 = sshll.u32 %s464_s23, 4  ;;  %s33_s22 = int_to_ptr.vmem [resolvable:$true] %s32_s22  ;;  %s55_s24 = int_to_ptr.vmem [resolvable:$true] %s54_s24 }
   0x6   :  { %s299_s27 = scalar_lea.hbm %s602_s1, 16 }
   0x7   :  { %p300_p0 = scmp.ne.s32.totalorder %s602_s1, %s299_s27  ;;  %p303_p1 = scmp.lt.u32.totalorder %s299_s27, %s602_s1 }
   0x9   :  { %p305_p2 = pnand %p303_p1, %p300_p0 }
   0xb   :  { %308 = shalt.err (!%p305_p2)
}
   0xc   :  { %s309_s8 = scalar_lea.vmem %s33_s22, 16  ;;  %s313_s9 = scalar_lea.vmem %s33_s22, 32 }
   0xd   :  { %p310_p3 = scmp.ne.s32.totalorder %s33_s22, %s309_s8  ;;  %p314_p4 = scmp.lt.s32.totalorder %s33_s22, %s33_s22 }
   0xe   :  { %p315_p5 = scmp.lt.s32.totalorder %s313_s9, %s309_s8 }
  0x10   :  { %p316_p6 = por %p315_p5, %p314_p4 }
  0x12   :  { %p317_p7 = pnand %p316_p6, %p310_p3 }
  0x14   :  { %320 = shalt.err (!%p317_p7)
}
  0x15   :  { %35 = dma.hbm_to_vmem [thread:$0]  %s602_s1, 16, %s33_s22, [#allocation6]  }
  0x16   :  { %s321_s14 = scalar_lea.hbm %s604_s3, 16 }
  0x17   :  { %p322_p8 = scmp.ne.s32.totalorder %s604_s3, %s321_s14  ;;  %p325_p9 = scmp.lt.u32.totalorder %s321_s14, %s604_s3 }
  0x19   :  { %p327_p10 = pnand %p325_p9, %p322_p8 }
  0x1b   :  { %330 = shalt.err (!%p327_p10)
}
  0x1c   :  { %s331_s19 = scalar_lea.vmem %s55_s24, 16  ;;  %s335_s20 = scalar_lea.vmem %s55_s24, 32 }
  0x1d   :  { %p332_p11 = scmp.ne.s32.totalorder %s55_s24, %s331_s19  ;;  %p336_p12 = scmp.lt.s32.totalorder %s55_s24, %s55_s24 }
  0x1e   :  { %p337_p13 = scmp.lt.s32.totalorder %s335_s20, %s331_s19 }
  0x20   :  { %p338_p0 = por %p337_p13, %p336_p12 }
  0x22   :  { %p339_p1 = pnand %p338_p0, %p332_p11 }
  0x24   :  { %342 = shalt.err (!%p339_p1)
}
  0x25   :  { %57 = dma.hbm_to_vmem [thread:$0]  %s604_s3, 16, %s55_s24, [#allocation9]  }
  0x26   :  { %s465_s22 = smov [#allocation2]   ;;  %s466_s25 = smov [#allocation7]  }
  0x27   :  { %s22_s23 = sshll.u32 %s465_s22, 4  ;;  %s41_s26 = sshll.u32 %s466_s25, 4  ;;  %s23_s23 = int_to_ptr.vmem [resolvable:$true] %s22_s23  ;;  %s534_s26 = int_to_ptr.vmem [resolvable:$true] %s41_s26 }
  0x28   :  { %s343_s29 = scalar_lea.hbm %s601_s0, 16 }
  0x29   :  { %p344_p2 = scmp.ne.s32.totalorder %s601_s0, %s343_s29  ;;  %p347_p3 = scmp.lt.u32.totalorder %s343_s29, %s601_s0 }
  0x2b   :  { %p349_p4 = pnand %p347_p3, %p344_p2 }
  0x2d   :  { %352 = shalt.err (!%p349_p4)
}
  0x2e   :  { %s353_s3 = scalar_lea.vmem %s23_s23, 16  ;;  %s357_s24 = scalar_lea.vmem %s23_s23, 32 }
  0x2f   :  { %p354_p5 = scmp.ne.s32.totalorder %s23_s23, %s353_s3  ;;  %p358_p6 = scmp.lt.s32.totalorder %s23_s23, %s23_s23 }
  0x30   :  { %p359_p7 = scmp.lt.s32.totalorder %s357_s24, %s353_s3 }
  0x32   :  { %p360_p8 = por %p359_p7, %p358_p6 }
  0x34   :  { %p361_p9 = pnand %p360_p8, %p354_p5 }
  0x36   :  { %364 = shalt.err (!%p361_p9)
}
  0x37   :  { %25 = dma.hbm_to_vmem [thread:$0]  %s601_s0, 16, %s23_s23, [#allocation3]  }
  0x38   :  { %s365_s14 = scalar_lea.hbm %s603_s2, 128 }
  0x39   :  { %p366_p10 = scmp.ne.s32.totalorder %s603_s2, %s365_s14  ;;  %p369_p11 = scmp.lt.u32.totalorder %s365_s14, %s603_s2 }
  0x3b   :  { %p371_p12 = pnand %p369_p11, %p366_p10 }
  0x3d   :  { %374 = shalt.err (!%p371_p12)
}
  0x3e   :  { %s375_s19 = scalar_lea.vmem %s534_s26, 128  ;;  %p380_p0 = scmp.lt.s32.totalorder %s534_s26, %s534_s26 }
  0x3f   :  { %p376_p13 = scmp.ne.s32.totalorder %s534_s26, %s375_s19  ;;  %p381_p1 = scmp.lt.s32.totalorder %s375_s19, %s375_s19 }
  0x41   :  { %p382_p2 = por %p381_p1, %p380_p0 }
  0x43   :  { %p383_p3 = pnand %p382_p2, %p376_p13 }
  0x45   :  { %386 = shalt.err (!%p383_p3)
}
  0x46   :  { %s467_s0 = smov 64   ;;  %s468_s20 = smov 4  }
  0x47   :  { %47 = dma.hbm_to_vmem [thread:$0]  %s603_s2, 128, %s534_s26, [#allocation6], %s467_s0, %s467_s0, %s468_s20  }
  0x48   :  { %s469_s22 = smov [#allocation10]   ;;  %s470_s25 = smov [#allocation11]  }
  0x49   :  { %s63_s23 = sshll.u32 %s469_s22, 4  ;;  %s76_s27 = sshll.u32 %s470_s25, 4  ;;  %s64_s23 = int_to_ptr.vmem [resolvable:$true] %s63_s23  ;;  %s77_s27 = int_to_ptr.vmem [resolvable:$true] %s76_s27 }
  0x4a   :  { %s387_s30 = scalar_lea.hbm %s605_s4, 256 }
  0x4b   :  { %p388_p4 = scmp.ne.s32.totalorder %s605_s4, %s387_s30  ;;  %p391_p5 = scmp.lt.u32.totalorder %s387_s30, %s605_s4 }
  0x4d   :  { %p393_p6 = pnand %p391_p5, %p388_p4 }
  0x4f   :  { %396 = shalt.err (!%p393_p6)
}
  0x50   :  { %s397_s2 = scalar_lea.vmem %s64_s23, 256  ;;  %p402_p8 = scmp.lt.s32.totalorder %s64_s23, %s64_s23 }
  0x51   :  { %p398_p7 = scmp.ne.s32.totalorder %s64_s23, %s397_s2  ;;  %p403_p9 = scmp.lt.s32.totalorder %s397_s2, %s397_s2 }
  0x53   :  { %p404_p10 = por %p403_p9, %p402_p8 }
  0x55   :  { %p405_p11 = pnand %p404_p10, %p398_p7 }
  0x57   :  { %408 = shalt.err (!%p405_p11)
}
  0x58   :  { %69 = dma.hbm_to_vmem [thread:$0]  %s605_s4, 256, %s64_s23, [#allocation9], %s467_s0, %s467_s0, %s468_s20  }
  0x59   :  { %s409_s12 = scalar_lea.hbm %s606_s5, 16 }
  0x5a   :  { %p410_p12 = scmp.ne.s32.totalorder %s606_s5, %s409_s12  ;;  %p413_p13 = scmp.lt.u32.totalorder %s409_s12, %s606_s5 }
  0x5c   :  { %p415_p0 = pnand %p413_p13, %p410_p12 }
  0x5e   :  { %418 = shalt.err (!%p415_p0)
}
  0x5f   :  { %s419_s17 = scalar_lea.vmem %s77_s27, 16  ;;  %s423_s18 = scalar_lea.vmem %s77_s27, 32 }
  0x60   :  { %p420_p1 = scmp.ne.s32.totalorder %s77_s27, %s419_s17  ;;  %p424_p2 = scmp.lt.s32.totalorder %s77_s27, %s77_s27 }
  0x61   :  { %p425_p3 = scmp.lt.s32.totalorder %s423_s18, %s419_s17 }
  0x63   :  { %p426_p4 = por %p425_p3, %p424_p2 }
  0x65   :  { %p427_p5 = pnand %p426_p4, %p420_p1 }
  0x67   :  { %430 = shalt.err (!%p427_p5)
}
  0x68   :  { %79 = dma.hbm_to_vmem [thread:$0]  %s606_s5, 16, %s77_s27, [#allocation12]  }
  0x69   :  { %453 = dma.done.wait [#allocation3], 16  }
  0x6a   :  { %454 = vsyncadd [#allocation3], 4294967280 }
  0x6b   :  { %455 = dma.done.wait [#allocation6], 144  }
  0x6c   :  { %456 = vsyncadd [#allocation6], 4294967152 }
  0x6d   :  { %457 = dma.done.wait [#allocation9], 272  }
  0x6e   :  { %458 = vsyncadd [#allocation9], 4294967024 }
  0x6f   :  { %459 = dma.done.wait [#allocation12], 16  }
  0x70   :  { %460 = vsyncadd [#allocation12], 4294967280  ;;  %v471_v0 = vmov 0.0   ;;  %vm472_vm0 = vmmov 0   ;;  %v296_v1 = vld [vmem:[#allocation7] sm:$0xff]   ;;  %v473_v3 = vmov 0  }
  0x71   :  { %270 = vmatprep.subr.bf16.mxu0 %v471_v0  ;;  %272 = vmatprep.mubr.msk.bf16.mxu0 %vm472_vm0, %v471_v0  ;;  %v102_v2 = vld [vmem:[#allocation5] sm:$0x1]  ;;  %v104_v7 = vld [vmem:[#allocation2] sm:$0x1]  ;;  %vm126_vm2 = vcmask 130048   ;;  %v297_v10 = vld [vmem:[#allocation10] sm:$0xff]  }
  0x72   :  { %276 = vmatprep.subr.bf16.mxu1 %v471_v0  ;;  %280 = vmatprep.mubr.msk.bf16.mxu1 %vm472_vm0, %v471_v0  ;;  %vm103_vm1 = vnez %v102_v2  ;;  %v298_v11 = vld [vmem:[#allocation10 + $0x8] sm:$0xff]   ;;  %v258_v12 = vld [vmem:[#allocation8] ss:$0 sm:$0xff]  ;;  %vm195_vm4 = vcmask 261120   ;;  %v261_v20 = vld [vmem:[#allocation11] ss:$0 sm:$0xff] }
  0x73   :  { %271 = vmatpush3.bf16.msra.mxu0 %v296_v1  ;;  %v105_v4 = vsel %vm103_vm1, 16843009, %v473_v3  ;;  %277 = vmatpush3.bf16.msra.mxu1 %v297_v10  ;;  %s474_s5 = smov [#allocation13]  }
  0x74   :  { %v106_v5 = vunpack.c.1.s8 %v105_v4  ;;  %v107_v6 = vunpack.c.0.s8 %v105_v4  ;;  %278 = vmatprep.subr.bf16.mxu1 %v471_v0  ;;  %s246_s0 = sshll.u32 %s474_s5, 4  ;;  %s247_s0 = int_to_ptr.vmem [resolvable:$true] %s246_s0 }
  0x75   :  { %s431_s20 = scalar_lea.vmem %s247_s0, 32  ;;  %p436_p7 = scmp.lt.s32.totalorder %s247_s0, %s247_s0 }
  0x76   :  { %v108_v8 = vpack.c.b16 %v106_v5, %v107_v6  ;;  %p432_p6 = scmp.ne.s32.totalorder %s247_s0, %s431_s20  ;;  %p437_p8 = scmp.lt.s32.totalorder %s431_s20, %s431_s20 }
  0x77   :  { %279 = vmatpush3.bf16.msra.mxu1 %v298_v11 }
  0x78   :  { %vm109_vm3 = vcmp.ne.s16.totalorder %v108_v8, 0  ;;  %p438_p9 = por %p437_p8, %p436_p7 }
  0x79   :  { %v110_v9 = vsel %vm109_vm3, %v104_v7, 0 }
  0x7a   :  { %273 = vmatmul.mubr.msk.bf16.vlgmr.msra.gmra.mrb[0].mxu0 %vm126_vm2, %v110_v9  ;;  %p439_p10 = pnand %p438_p9, %p432_p6 }
 0x14d   :  { %v164_v13 = vpop.f32.mrb[0].mxu0 }
 0x14e   :  { %v165_v14 = vadd.f32 %v258_v12, %v164_v13  ;;  %v274_v15 = vpop.f32.mrb[1].mxu0 }
 0x14f   :  { %v167_v16 = vpop.f32.mrb[2].mxu0 }
 0x150   :  { %v170_v17 = vmax.f32 %v165_v14, 0.0  ;;  %v275_v18 = vpop.f32.mrb[3].mxu0 }
 0x152   :  { %v171_v19 = vpack.c.bf16 %v170_v17, %v170_v17 }
 0x154   :  { %281 = vmatmul.mubr.msk.bf16.vlgmr.msra.gmra.mrb[0].mxu1 %vm195_vm4, %v171_v19 }
 0x227   :  { %v233_v21 = vpop.f32.mrb[0].mxu1 }
 0x228   :  { %v234_v22 = vadd.f32 %v261_v20, %v233_v21  ;;  %v282_v23 = vpop.f32.mrb[1].mxu1 }
 0x229   :  { %v236_v24 = vpop.f32.mrb[2].mxu1 }
 0x22a   :  { %239 = vst [vmem:[#allocation13] sm:$0x3] %v234_v22  ;;  %v283_v25 = vpop.f32.mrb[3].mxu1 }
 0x22b   :  { %442 = shalt.err (!%p439_p10)
}
 0x22c   :  { %s443_s22 = scalar_lea.hbm %s607_s6, 32 }
 0x22d   :  { %p444_p11 = scmp.ne.s32.totalorder %s607_s6, %s443_s22  ;;  %p447_p12 = scmp.lt.u32.totalorder %s443_s22, %s607_s6 }
 0x22f   :  { %p449_p13 = pnand %p447_p12, %p444_p11 }
 0x231   :  { %452 = shalt.err (!%p449_p13)
}
 0x232   :  { %249 = dma.vmem_to_hbm [thread:$0]  %s247_s0, 32, %s607_s6, [#allocation4]  }
 0x233   :  { %461 = dma.done.wait [#allocation4], 32  }
 0x234   :  { %462 = vsyncadd [#allocation4], 4294967264 }
 0x235   :  { %253 = vsyncpa [#allocation3], 1 }
 0x236   :  { %254 = vsyncpa [#allocation6], 1 }
 0x237   :  { %255 = vsyncpa [#allocation9], 1 }
 0x238   :  { %256 = vsyncpa [#allocation12], 1 }
 0x239   :  { %257 = vsyncpa [#allocation4], 1 }

</bundles_post_ra>
